<compile_context>
chip_gen: v7x
topology: tpu7x:2x2x1
jax: 0.10.0
libtpu: 0.0.40
codegen_flags: <defaults>
</compile_context>

<pallas_src>
import functools

import jax
import jax.numpy as jnp
from jax.experimental import pallas as pl
from jax.experimental.pallas import tpu as pltpu

H = 128                 # padded feature width (real widths: 64 hidden, 4 out)
OUT = 4                 # real number of moves
FUSED_MAX_ROWS = 1024   # single fused-kernel path up to this many batch rows
TILE_B = 512            # batch tile for the two-pass (large-batch) path


def _round_up(a, b):
    return (a + b - 1) // b * b


def _mlp(x, w1, b1, w2, b2, w3, b3, w4, b4):
    """4-layer ReLU MLP on padded 128-wide tiles (MXU, f32 accumulation)."""
    h = jnp.maximum(jnp.dot(x, w1, preferred_element_type=jnp.float32) + b1, 0.0)
    h = jnp.maximum(jnp.dot(h, w2, preferred_element_type=jnp.float32) + b2, 0.0)
    h = jnp.maximum(jnp.dot(h, w3, preferred_element_type=jnp.float32) + b3, 0.0)
    return jnp.maximum(jnp.dot(h, w4, preferred_element_type=jnp.float32) + b4, 0.0)


# --------------------------------------------------------------------------
# Fused path: whole batch in one kernel (MLP + softmax), no HBM round-trip.
# --------------------------------------------------------------------------
def _fused_kernel(x_ref,
                  w1_ref, b1_ref, w2_ref, b2_ref,
                  w3_ref, b3_ref, w4_ref, b4_ref,
                  o_ref, *, batch, softmax_axis):
    logits = _mlp(x_ref[...],
                  w1_ref[...], b1_ref[...], w2_ref[...], b2_ref[...],
                  w3_ref[...], b3_ref[...], w4_ref[...], b4_ref[...])

    if softmax_axis == 0:
        # Batched semantics: softmax over the batch rows, per column.
        idx = jax.lax.broadcasted_iota(jnp.int32, logits.shape, 0)
        valid = idx < batch          # exclude zero-padded batch rows
        axis = 0
    else:
        # Single-board semantics: softmax over the 4 real move columns.
        idx = jax.lax.broadcasted_iota(jnp.int32, logits.shape, 1)
        valid = idx < OUT            # exclude zero-padded output columns
        axis = 1

    # Post-ReLU logits are >= 0, so a masked fill of 0.0 never raises the max.
    m = jnp.max(jnp.where(valid, logits, 0.0), axis=axis, keepdims=True)
    p = jnp.where(valid, jnp.exp(logits - m), 0.0)
    l = jnp.sum(p, axis=axis, keepdims=True)
    o_ref[...] = p * pl.reciprocal(l, approx=True)


# --------------------------------------------------------------------------
# Two-pass path for large batches: tiled MLP + online dim-0 softmax stats,
# then a parallel lane-dense normalize pass.
# --------------------------------------------------------------------------
def _fwd_stats_kernel(x_ref,
                      w1_ref, b1_ref, w2_ref, b2_ref,
                      w3_ref, b3_ref, w4_ref, b4_ref,
                      logits_ref, m_ref, l_ref,
                      *, batch, tile_b):
    """Pass 1: per-batch-tile MLP + online per-column softmax statistics.

    logits_ref : (tile_b, H) post-ReLU fc4 logits for this batch tile.
    m_ref/l_ref: (1, H) running per-column max / sum-of-exp over the batch;
                 constant block index -> VMEM-resident accumulators.
    """
    i = pl.program_id(0)

    logits = _mlp(x_ref[...],
                  w1_ref[...], b1_ref[...], w2_ref[...], b2_ref[...],
                  w3_ref[...], b3_ref[...], w4_ref[...], b4_ref[...])
    logits_ref[...] = logits

    # Rows >= batch are zero-padding; exclude from dim-0 statistics.
    row = jax.lax.broadcasted_iota(jnp.int32, logits.shape, 0) + i * tile_b
    valid = row < batch
    tile_max = jnp.max(jnp.where(valid, logits, 0.0), axis=0, keepdims=True)

    @pl.when(i == 0)
    def _():
        p = jnp.where(valid, jnp.exp(logits - tile_max), 0.0)
        m_ref[...] = tile_max
        l_ref[...] = jnp.sum(p, axis=0, keepdims=True)

    @pl.when(i > 0)
    def _():
        m_old = m_ref[...]
        m_new = jnp.maximum(m_old, tile_max)
        alpha = jnp.exp(m_old - m_new)
        p = jnp.where(valid, jnp.exp(logits - m_new), 0.0)
        l_ref[...] = alpha * l_ref[...] + jnp.sum(p, axis=0, keepdims=True)
        m_ref[...] = m_new


def _normalize_kernel(logits_ref, m_ref, l_ref, o_ref):
    """Pass 2: lane-dense softmax normalization of a batch tile."""
    inv_l = pl.reciprocal(l_ref[...], approx=True)
    o_ref[...] = jnp.exp(logits_ref[...] - m_ref[...]) * inv_l


# --------------------------------------------------------------------------
# Wrapper
# --------------------------------------------------------------------------
def _pad_params(params):
    w1 = jnp.pad(params["w1"], ((0, 0), (0, H - 64)))           # (16, 128)
    b1 = jnp.pad(params["b1"], ((0, 0), (0, H - 64)))           # (1, 128)
    w2 = jnp.pad(params["w2"], ((0, H - 64), (0, H - 64)))      # (128, 128)
    b2 = jnp.pad(params["b2"], ((0, 0), (0, H - 64)))
    w3 = jnp.pad(params["w3"], ((0, H - 64), (0, H - 64)))
    b3 = jnp.pad(params["b3"], ((0, 0), (0, H - 64)))
    w4 = jnp.pad(params["w4"], ((0, H - 64), (0, H - OUT)))     # (128, 128)
    b4 = jnp.pad(params["b4"], ((0, 0), (0, H - OUT)))
    return w1, b1, w2, b2, w3, b3, w4, b4


@functools.partial(jax.jit, static_argnames=("softmax_axis",))
def _forward_2d(x, params, softmax_axis):
    """x: (B, 16) float32 -> (B, 4) float32 probabilities."""
    B = x.shape[0]
    w1, b1, w2, b2, w3, b3, w4, b4 = _pad_params(params)
    const2d = lambda shape: pl.BlockSpec(shape, lambda i: (0, 0))

    if B <= FUSED_MAX_ROWS:
        Bp = _round_up(B, 8)
        xp = jnp.pad(x, ((0, Bp - B), (0, 0)))                  # (Bp, 16)
        probs = pl.pallas_call(
            functools.partial(_fused_kernel, batch=B, softmax_axis=softmax_axis),
            out_shape=jax.ShapeDtypeStruct((Bp, H), jnp.float32),
            grid_spec=pltpu.PrefetchScalarGridSpec(
                num_scalar_prefetch=0,
                grid=(1,),
                in_specs=[
                    const2d((Bp, 16)),                           # x
                    const2d((16, H)), const2d((1, H)),           # w1, b1
                    const2d((H, H)), const2d((1, H)),            # w2, b2
                    const2d((H, H)), const2d((1, H)),            # w3, b3
                    const2d((H, H)), const2d((1, H)),            # w4, b4
                ],
                out_specs=const2d((Bp, H)),
            ),
            compiler_params=pltpu.CompilerParams(
                dimension_semantics=("arbitrary",)),
        )(xp, w1, b1, w2, b2, w3, b3, w4, b4)
        return probs[:B, :OUT]

    # Large batch (only reached for batched / axis-0 softmax semantics).
    TB = TILE_B
    Bp = _round_up(B, TB)
    n_tiles = Bp // TB
    xp = jnp.pad(x, ((0, Bp - B), (0, 0)))                      # (Bp, 16)

    logits, m, l = pl.pallas_call(
        functools.partial(_fwd_stats_kernel, batch=B, tile_b=TB),
        out_shape=(
            jax.ShapeDtypeStruct((Bp, H), jnp.float32),
            jax.ShapeDtypeStruct((1, H), jnp.float32),
            jax.ShapeDtypeStruct((1, H), jnp.float32),
        ),
        grid_spec=pltpu.PrefetchScalarGridSpec(
            num_scalar_prefetch=0,
            grid=(n_tiles,),
            in_specs=[
                pl.BlockSpec((TB, 16), lambda i: (i, 0)),        # x batch tile
                const2d((16, H)), const2d((1, H)),               # w1, b1
                const2d((H, H)), const2d((1, H)),                # w2, b2
                const2d((H, H)), const2d((1, H)),                # w3, b3
                const2d((H, H)), const2d((1, H)),                # w4, b4
            ],
            out_specs=(
                pl.BlockSpec((TB, H), lambda i: (i, 0)),         # logits tile
                pl.BlockSpec((1, H), lambda i: (0, 0)),          # running max
                pl.BlockSpec((1, H), lambda i: (0, 0)),          # running sum-exp
            ),
        ),
        compiler_params=pltpu.CompilerParams(
            dimension_semantics=("arbitrary",)),
    )(xp, w1, b1, w2, b2, w3, b3, w4, b4)

    probs = pl.pallas_call(
        _normalize_kernel,
        out_shape=jax.ShapeDtypeStruct((Bp, H), jnp.float32),
        grid_spec=pltpu.PrefetchScalarGridSpec(
            num_scalar_prefetch=0,
            grid=(n_tiles,),
            in_specs=[
                pl.BlockSpec((TB, H), lambda i: (i, 0)),
                pl.BlockSpec((1, H), lambda i: (0, 0)),
                pl.BlockSpec((1, H), lambda i: (0, 0)),
            ],
            out_specs=pl.BlockSpec((TB, H), lambda i: (i, 0)),
        ),
        compiler_params=pltpu.CompilerParams(
            dimension_semantics=("parallel",)),
    )(logits, m, l)

    return probs[:B, :OUT]


def nn_forward(x, params):
    """Forward pass of NN.

    x: (B, 16) -> (B, 4), softmax over the batch axis (dim=0), per column.
    x: (16,)   -> (4,),   softmax over the 4 moves (dim=0 of the logits).
    """
    if x.ndim == 1:
        return _forward_2d(x[None, :], params, softmax_axis=1)[0]
    return _forward_2d(x, params, softmax_axis=0)


# --------------------------------------------------------------------------
# Init / reference / self-test
# --------------------------------------------------------------------------
def init_params(key):
    """Deterministic init mimicking torch.nn.Linear defaults:
    U(-1/sqrt(fan_in), 1/sqrt(fan_in)) for weight and bias.
    Weights stored transposed as (in_features, out_features)."""
    dims = [(16, 64), (64, 64), (64, 64), (64, OUT)]
    params = {}
    for i, (fan_in, fan_out) in enumerate(dims, start=1):
        key, kw, kb = jax.random.split(key, 3)
        bound = 1.0 / jnp.sqrt(jnp.float32(fan_in))
        params[f"w{i}"] = jax.random.uniform(
            kw, (fan_in, fan_out), jnp.float32, -bound, bound)
        params[f"b{i}"] = jax.random.uniform(
            kb, (1, fan_out), jnp.float32, -bound, bound)
    return params


def _reference_forward(x, params):
    """Pure-JAX reference with identical math (unpadded)."""
    one_d = (x.ndim == 1)

    def lin(h, w, b):
        b = b[0] if one_d else b
        return jnp.maximum(h @ w + b, 0.0)

    h = lin(x, params["w1"], params["b1"])
    h = lin(h, params["w2"], params["b2"])
    h = lin(h, params["w3"], params["b3"])
    h = lin(h, params["w4"], params["b4"])
    return jax.nn.softmax(h, axis=0)   # dim=0, matching nn.Softmax(dim=0)


if __name__ == "__main__":
    key = jax.random.PRNGKey(0)
    key, kp, kx1, kx2, kx3, kx4 = jax.random.split(key, 6)
    params = init_params(kp)

    # 1) Small batch (fused path), values ~ log2 tile values of a 4x4 board.
    B1 = 8
    x1 = jax.random.uniform(kx1, (B1, 16), jnp.float32, 0.0, 11.0)
    out1 = jax.block_until_ready(nn_forward(x1, params))
    ref1 = _reference_forward(x1, params)
    assert out1.shape == (B1, OUT)
    assert jnp.allclose(out1, ref1, atol=1e-4, rtol=1e-2), "mismatch (small B)"
    assert jnp.allclose(jnp.sum(out1, axis=0), jnp.ones((OUT,)), atol=1e-2)

    # 2) Mid batch, non-multiple of 8 (fused path with batch-row padding).
    B2 = 203
    x2 = jax.random.uniform(kx2, (B2, 16), jnp.float32, 0.0, 11.0)
    out2 = jax.block_until_ready(nn_forward(x2, params))
    ref2 = _reference_forward(x2, params)
    assert out2.shape == (B2, OUT)
    assert jnp.allclose(out2, ref2, atol=1e-4, rtol=1e-2), "mismatch (mid B)"
    assert jnp.allclose(jnp.sum(out2, axis=0), jnp.ones((OUT,)), atol=1e-2)

    # 3) Large, non-tile-multiple batch: exercises the two-pass online
    #    softmax, batch-row masking and the pipelined grid.
    B3 = 1037
    x3 = jax.random.uniform(kx3, (B3, 16), jnp.float32, 0.0, 11.0)
    out3 = jax.block_until_ready(nn_forward(x3, params))
    ref3 = _reference_forward(x3, params)
    assert out3.shape == (B3, OUT)
    assert jnp.allclose(out3, ref3, atol=1e-4, rtol=1e-2), "mismatch (large B)"
    assert jnp.allclose(jnp.sum(out3, axis=0), jnp.ones((OUT,)), atol=1e-2)

    # 4) Single un-batched board: softmax over the 4 moves (torch 1-D path).
    x4 = jax.random.uniform(kx4, (16,), jnp.float32, 0.0, 11.0)
    out4 = jax.block_until_ready(nn_forward(x4, params))
    ref4 = _reference_forward(x4, params)
    assert out4.shape == (OUT,)
    assert jnp.allclose(out4, ref4, atol=1e-4, rtol=1e-2), "mismatch (1-D x)"
    assert jnp.allclose(jnp.sum(out4), 1.0, atol=1e-2)

    print("KERNEL_OK")
</pallas_src>

<mosaic_0001>
module attributes {stable_mosaic.version = 11 : i64} {
  func.func @_fused_kernel(%arg0: i32, %arg1: memref<8x16xf32, #tpu.memory_space<vmem>>, %arg2: memref<16x128xf32, #tpu.memory_space<vmem>>, %arg3: memref<1x128xf32, #tpu.memory_space<vmem>>, %arg4: memref<128x128xf32, #tpu.memory_space<vmem>>, %arg5: memref<1x128xf32, #tpu.memory_space<vmem>>, %arg6: memref<128x128xf32, #tpu.memory_space<vmem>>, %arg7: memref<1x128xf32, #tpu.memory_space<vmem>>, %arg8: memref<128x128xf32, #tpu.memory_space<vmem>>, %arg9: memref<1x128xf32, #tpu.memory_space<vmem>>, %arg10: memref<8x128xf32, #tpu.memory_space<vmem>>) attributes {dimension_semantics = [#tpu.dimension_semantics<arbitrary>], iteration_bounds = array<i64: 1>, scalar_prefetch = 0 : i64, scratch_operands = 0 : i64, tpu.core_type = #tpu.core_type<tc>, window_params = [{pipeline_mode = #tpu.pipeline_mode<synchronous>, transform_indices = @transform_0, window_bounds = array<i64: 8, 16>}, {pipeline_mode = #tpu.pipeline_mode<synchronous>, transform_indices = @transform_1, window_bounds = array<i64: 16, 128>}, {pipeline_mode = #tpu.pipeline_mode<synchronous>, transform_indices = @transform_2, window_bounds = array<i64: 1, 128>}, {pipeline_mode = #tpu.pipeline_mode<synchronous>, transform_indices = @transform_3, window_bounds = array<i64: 128, 128>}, {pipeline_mode = #tpu.pipeline_mode<synchronous>, transform_indices = @transform_4, window_bounds = array<i64: 1, 128>}, {pipeline_mode = #tpu.pipeline_mode<synchronous>, transform_indices = @transform_5, window_bounds = array<i64: 128, 128>}, {pipeline_mode = #tpu.pipeline_mode<synchronous>, transform_indices = @transform_6, window_bounds = array<i64: 1, 128>}, {pipeline_mode = #tpu.pipeline_mode<synchronous>, transform_indices = @transform_7, window_bounds = array<i64: 128, 128>}, {pipeline_mode = #tpu.pipeline_mode<synchronous>, transform_indices = @transform_8, window_bounds = array<i64: 1, 128>}, {pipeline_mode = #tpu.pipeline_mode<synchronous>, transform_indices = @transform_9, window_bounds = array<i64: 8, 128>}]} {
    %c0 = arith.constant 0 : index
    %c0_0 = arith.constant 0 : index
    %0 = vector.load %arg1[%c0, %c0_0] : memref<8x16xf32, #tpu.memory_space<vmem>>, vector<8x16xf32>
    %c0_1 = arith.constant 0 : index
    %c0_2 = arith.constant 0 : index
    %1 = vector.load %arg2[%c0_1, %c0_2] : memref<16x128xf32, #tpu.memory_space<vmem>>, vector<16x128xf32>
    %c0_3 = arith.constant 0 : index
    %c0_4 = arith.constant 0 : index
    %2 = vector.load %arg3[%c0_3, %c0_4] : memref<1x128xf32, #tpu.memory_space<vmem>>, vector<1x128xf32>
    %c0_5 = arith.constant 0 : index
    %c0_6 = arith.constant 0 : index
    %3 = vector.load %arg4[%c0_5, %c0_6] : memref<128x128xf32, #tpu.memory_space<vmem>>, vector<128x128xf32>
    %c0_7 = arith.constant 0 : index
    %c0_8 = arith.constant 0 : index
    %4 = vector.load %arg5[%c0_7, %c0_8] : memref<1x128xf32, #tpu.memory_space<vmem>>, vector<1x128xf32>
    %c0_9 = arith.constant 0 : index
    %c0_10 = arith.constant 0 : index
    %5 = vector.load %arg6[%c0_9, %c0_10] : memref<128x128xf32, #tpu.memory_space<vmem>>, vector<128x128xf32>
    %c0_11 = arith.constant 0 : index
    %c0_12 = arith.constant 0 : index
    %6 = vector.load %arg7[%c0_11, %c0_12] : memref<1x128xf32, #tpu.memory_space<vmem>>, vector<1x128xf32>
    %c0_13 = arith.constant 0 : index
    %c0_14 = arith.constant 0 : index
    %7 = vector.load %arg8[%c0_13, %c0_14] : memref<128x128xf32, #tpu.memory_space<vmem>>, vector<128x128xf32>
    %c0_15 = arith.constant 0 : index
    %c0_16 = arith.constant 0 : index
    %8 = vector.load %arg9[%c0_15, %c0_16] : memref<1x128xf32, #tpu.memory_space<vmem>>, vector<1x128xf32>
    %cst = arith.constant dense<0.000000e+00> : vector<8x128xf32>
    %9 = tpu.matmul %0, %1, %cst {dimension_numbers = #tpu.dot_dimension_numbers<[1], [0], [0], [1], [0, 0, 1, 1], [], []>} : vector<8x16xf32>, vector<16x128xf32>, vector<8x128xf32> -> vector<8x128xf32>
    %10 = vector.broadcast %2 : vector<1x128xf32> to vector<8x128xf32>
    %11 = arith.addf %9, %10 : vector<8x128xf32>
    %cst_17 = arith.constant 0.000000e+00 : f32
    %12 = vector.broadcast %cst_17 : f32 to vector<8x128xf32>
    %13 = arith.maximumf %11, %12 : vector<8x128xf32>
    %cst_18 = arith.constant dense<0.000000e+00> : vector<8x128xf32>
    %14 = tpu.matmul %13, %3, %cst_18 {dimension_numbers = #tpu.dot_dimension_numbers<[1], [0], [0], [1], [0, 0, 1, 1], [], []>} : vector<8x128xf32>, vector<128x128xf32>, vector<8x128xf32> -> vector<8x128xf32>
    %15 = vector.broadcast %4 : vector<1x128xf32> to vector<8x128xf32>
    %16 = arith.addf %14, %15 : vector<8x128xf32>
    %cst_19 = arith.constant 0.000000e+00 : f32
    %17 = vector.broadcast %cst_19 : f32 to vector<8x128xf32>
    %18 = arith.maximumf %16, %17 : vector<8x128xf32>
    %cst_20 = arith.constant dense<0.000000e+00> : vector<8x128xf32>
    %19 = tpu.matmul %18, %5, %cst_20 {dimension_numbers = #tpu.dot_dimension_numbers<[1], [0], [0], [1], [0, 0, 1, 1], [], []>} : vector<8x128xf32>, vector<128x128xf32>, vector<8x128xf32> -> vector<8x128xf32>
    %20 = vector.broadcast %6 : vector<1x128xf32> to vector<8x128xf32>
    %21 = arith.addf %19, %20 : vector<8x128xf32>
    %cst_21 = arith.constant 0.000000e+00 : f32
    %22 = vector.broadcast %cst_21 : f32 to vector<8x128xf32>
    %23 = arith.maximumf %21, %22 : vector<8x128xf32>
    %cst_22 = arith.constant dense<0.000000e+00> : vector<8x128xf32>
    %24 = tpu.matmul %23, %7, %cst_22 {dimension_numbers = #tpu.dot_dimension_numbers<[1], [0], [0], [1], [0, 0, 1, 1], [], []>} : vector<8x128xf32>, vector<128x128xf32>, vector<8x128xf32> -> vector<8x128xf32>
    %25 = vector.broadcast %8 : vector<1x128xf32> to vector<8x128xf32>
    %26 = arith.addf %24, %25 : vector<8x128xf32>
    %cst_23 = arith.constant 0.000000e+00 : f32
    %27 = vector.broadcast %cst_23 : f32 to vector<8x128xf32>
    %28 = arith.maximumf %26, %27 : vector<8x128xf32>
    %29 = tpu.iota {dimensions = array<i32: 0>} : vector<8x128xi32>
    %c8_i32 = arith.constant 8 : i32
    %30 = vector.broadcast %c8_i32 : i32 to vector<8x128xi32>
    %31 = arith.cmpi slt, %29, %30 : vector<8x128xi32>
    %cst_24 = arith.constant 0.000000e+00 : f32
    %32 = vector.broadcast %cst_24 : f32 to vector<8x128xf32>
    %33 = arith.select %31, %28, %32 : vector<8x128xi1>, vector<8x128xf32>
    %cst_25 = arith.constant dense<0xFF800000> : vector<128xf32>
    %34 = vector.multi_reduction <maximumf>, %33, %cst_25 [0] : vector<8x128xf32> to vector<128xf32>
    %35 = vector.shape_cast %34 : vector<128xf32> to vector<1x128xf32>
    %36 = vector.broadcast %35 : vector<1x128xf32> to vector<8x128xf32>
    %37 = arith.subf %28, %36 : vector<8x128xf32>
    %38 = math.exp %37 : vector<8x128xf32>
    %cst_26 = arith.constant 0.000000e+00 : f32
    %39 = vector.broadcast %cst_26 : f32 to vector<8x128xf32>
    %40 = arith.select %31, %38, %39 : vector<8x128xi1>, vector<8x128xf32>
    %cst_27 = arith.constant dense<0.000000e+00> : vector<128xf32>
    %41 = vector.multi_reduction <add>, %40, %cst_27 [0] : vector<8x128xf32> to vector<128xf32>
    %42 = vector.shape_cast %41 : vector<128xf32> to vector<1x128xf32>
    %43 = tpu.reciprocal %42 {approx = true} : vector<1x128xf32> -> vector<1x128xf32>
    %44 = vector.broadcast %43 : vector<1x128xf32> to vector<8x128xf32>
    %45 = arith.mulf %40, %44 : vector<8x128xf32>
    %c0_28 = arith.constant 0 : index
    %c0_29 = arith.constant 0 : index
    %46 = vector.load %arg10[%c0_28, %c0_29] : memref<8x128xf32, #tpu.memory_space<vmem>>, vector<8x128xf32>
    tpu.vector_store %arg10[%c0_28, %c0_29], %45 {strides = array<i32>} : memref<8x128xf32, #tpu.memory_space<vmem>>, vector<8x128xf32>,
    return
  }
  func.func @transform_0(%arg0: i32) -> (i32, i32) {
    %c0_i32 = arith.constant 0 : i32
    %c0_i32_0 = arith.constant 0 : i32
    %c0_i32_1 = arith.constant 0 : i32
    return %c0_i32, %c0_i32_0 : i32, i32
  }
  func.func @transform_1(%arg0: i32) -> (i32, i32) {
    %c0_i32 = arith.constant 0 : i32
    %c0_i32_0 = arith.constant 0 : i32
    %c0_i32_1 = arith.constant 0 : i32
    return %c0_i32, %c0_i32_0 : i32, i32
  }
  func.func @transform_2(%arg0: i32) -> (i32, i32) {
    %c0_i32 = arith.constant 0 : i32
    %c0_i32_0 = arith.constant 0 : i32
    %c0_i32_1 = arith.constant 0 : i32
    return %c0_i32, %c0_i32_0 : i32, i32
  }
  func.func @transform_3(%arg0: i32) -> (i32, i32) {
    %c0_i32 = arith.constant 0 : i32
    %c0_i32_0 = arith.constant 0 : i32
    %c0_i32_1 = arith.constant 0 : i32
    return %c0_i32, %c0_i32_0 : i32, i32
  }
  func.func @transform_4(%arg0: i32) -> (i32, i32) {
    %c0_i32 = arith.constant 0 : i32
    %c0_i32_0 = arith.constant 0 : i32
    %c0_i32_1 = arith.constant 0 : i32
    return %c0_i32, %c0_i32_0 : i32, i32
  }
  func.func @transform_5(%arg0: i32) -> (i32, i32) {
    %c0_i32 = arith.constant 0 : i32
    %c0_i32_0 = arith.constant 0 : i32
    %c0_i32_1 = arith.constant 0 : i32
    return %c0_i32, %c0_i32_0 : i32, i32
  }
  func.func @transform_6(%arg0: i32) -> (i32, i32) {
    %c0_i32 = arith.constant 0 : i32
    %c0_i32_0 = arith.constant 0 : i32
    %c0_i32_1 = arith.constant 0 : i32
    return %c0_i32, %c0_i32_0 : i32, i32
  }
  func.func @transform_7(%arg0: i32) -> (i32, i32) {
    %c0_i32 = arith.constant 0 : i32
    %c0_i32_0 = arith.constant 0 : i32
    %c0_i32_1 = arith.constant 0 : i32
    return %c0_i32, %c0_i32_0 : i32, i32
  }
  func.func @transform_8(%arg0: i32) -> (i32, i32) {
    %c0_i32 = arith.constant 0 : i32
    %c0_i32_0 = arith.constant 0 : i32
    %c0_i32_1 = arith.constant 0 : i32
    return %c0_i32, %c0_i32_0 : i32, i32
  }
  func.func @transform_9(%arg0: i32) -> (i32, i32) {
    %c0_i32 = arith.constant 0 : i32
    %c0_i32_0 = arith.constant 0 : i32
    %c0_i32_1 = arith.constant 0 : i32
    return %c0_i32, %c0_i32_0 : i32, i32
  }
}

</mosaic_0001>

<bundles_post_ra>
// kernel: _forward_2d.1
= control target key start
LH: loop header
LB: loop body
LE: loop exit
PB: predicated region body
PF: predicated region fallthrough
CT: control target
= control target key end

     0   :  { %v679_v0 = vmov 0.0|0.0   ;;  %vm680_vm0 = vmmov 0   ;;  %v681_v3 = vmov 0.0   ;;  %vm93_vm1 = vcmask 130048   ;;  %s933_s1 = inlined_call_operand.vmem [shape: f32[16,128], index: 1, kind: input, shape index: {}]   ;;  %s934_s3 = inlined_call_operand.vmem [shape: f32[128,128], index: 3, kind: input, shape index: {}]   ;;  %s935_s0 = inlined_call_operand.vmem [shape: f32[8,16], index: 0, kind: input, shape index: {}]   ;;  %s936_s5 = inlined_call_operand.vmem [shape: f32[128,128], index: 5, kind: input, shape index: {}]   ;;  %s937_s2 = inlined_call_operand.vmem [shape: f32[1,128], index: 2, kind: input, shape index: {}]   ;;  %s938_s7 = inlined_call_operand.vmem [shape: f32[128,128], index: 7, kind: input, shape index: {}]   ;;  %s939_s4 = inlined_call_operand.vmem [shape: f32[1,128], index: 4, kind: input, shape index: {}]   ;;  %s940_s6 = inlined_call_operand.vmem [shape: f32[1,128], index: 6, kind: input, shape index: {}]   ;;  %s941_s8 = inlined_call_operand.vmem [shape: f32[1,128], index: 8, kind: input, shape index: {}]   ;;  %s942_s9 = inlined_call_operand.vmem [shape: f32[8,128], index: 9, kind: output, shape index: {}]  }
   0x1   :  { %597 = vmatprep.subr.bf16.mxu0 %v679_v0  ;;  %v33_v1 = vld [vmem:[%s933_s1] sm:$0xff]  ;;  %v34_v2 = vld [vmem:[%s933_s1 + $0x8] sm:$0xff]  ;;  %489 = vmatprep.mubr.msk.f32.mxu0 %vm680_vm0, %v681_v3  ;;  %v38_v7 = vld [vmem:[%s934_s3 + $0x10] sm:$0xff] }
   0x2   :  { %v598_v4 = vpack.c.bf16 %v34_v2, %v33_v1  ;;  %600 = vmatprep.subr.bf16.mxu1 %v679_v0  ;;  %v36_v5 = vld [vmem:[%s934_s3] sm:$0xff]  ;;  %v37_v6 = vld [vmem:[%s934_s3 + $0x8] sm:$0xff]  ;;  %524 = vmatprep.mubr.msk.f32.mxu1 %vm680_vm0, %v681_v3  ;;  %v39_v9 = vld [vmem:[%s934_s3 + $0x18] sm:$0xff] }
   0x3   :  { %v601_v8 = vpack.c.bf16 %v37_v6, %v36_v5  ;;  %v32_v10 = vld [vmem:[%s935_s0] sm:$0xff]  ;;  %v604_v11 = vpack.c.bf16 %v39_v9, %v38_v7  ;;  %v41_v13 = vld [vmem:[%s934_s3 + $0x28] sm:$0xff]  ;;  %v42_v15 = vld [vmem:[%s934_s3 + $0x30] sm:$0xff] }
   0x4   :  { %599 = vmatpush3.bf16.msra.mxu0 %v598_v4  ;;  %v40_v12 = vld [vmem:[%s934_s3 + $0x20] sm:$0xff]  ;;  %v43_v16 = vld [vmem:[%s934_s3 + $0x38] sm:$0xff]  ;;  %v45_v19 = vld [vmem:[%s934_s3 + $0x48] sm:$0xff] }
   0x5   :  { %602 = vmatpush3.bf16.msra.mxu1 %v601_v8  ;;  %624 = vmatprep.subr.bf16.mxu0 %v679_v0  ;;  %v607_v14 = vpack.c.bf16 %v41_v13, %v40_v12  ;;  %v610_v17 = vpack.c.bf16 %v43_v16, %v42_v15  ;;  %v44_v18 = vld [vmem:[%s934_s3 + $0x40] sm:$0xff]  ;;  %v46_v21 = vld [vmem:[%s934_s3 + $0x50] sm:$0xff]  ;;  %v47_v22 = vld [vmem:[%s934_s3 + $0x58] sm:$0xff] }
   0x6   :  { %603 = vmatprep.subr.bf16.mxu1 %v679_v0  ;;  %v613_v20 = vpack.c.bf16 %v45_v19, %v44_v18  ;;  %v616_v23 = vpack.c.bf16 %v47_v22, %v46_v21  ;;  %v48_v24 = vld [vmem:[%s934_s3 + $0x60] sm:$0xff]  ;;  %v49_v25 = vld [vmem:[%s934_s3 + $0x68] sm:$0xff]  ;;  %v50_v27 = vld [vmem:[%s934_s3 + $0x70] sm:$0xff] }
   0x7   :  { %490 = vmatmul.mubr.msk.f32.vlgmr.msra.gmra.mrb[0].mxu0 %vm93_vm1, %v32_v10  ;;  %v619_v26 = vpack.c.bf16 %v49_v25, %v48_v24  ;;  %v51_v28 = vld [vmem:[%s934_s3 + $0x78] sm:$0xff]  ;;  %v53_v30 = vld [vmem:[%s936_s5] sm:$0xff]  ;;  %v54_v31 = vld [vmem:[%s936_s5 + $0x8] sm:$0xff] }
   0x8   :  { %559 = vmatprep.mubr.msk.f32.mxu0 %vm680_vm0, %v681_v3  ;;  %v622_v29 = vpack.c.bf16 %v51_v28, %v50_v27  ;;  %v55_v32 = vld [vmem:[%s936_s5 + $0x10] sm:$0xff]  ;;  %v625_v33 = vpack.c.bf16 %v54_v31, %v53_v30  ;;  %v56_v34 = vld [vmem:[%s936_s5 + $0x18] sm:$0xff]  ;;  %v57_v36 = vld [vmem:[%s936_s5 + $0x20] sm:$0xff] }
   0x9   :  { %605 = vmatpush3.bf16.msra.mxu1 %v604_v11  ;;  %v628_v35 = vpack.c.bf16 %v56_v34, %v55_v32  ;;  %v58_v37 = vld [vmem:[%s936_s5 + $0x28] sm:$0xff]  ;;  %v59_v39 = vld [vmem:[%s936_s5 + $0x30] sm:$0xff]  ;;  %v60_v40 = vld [vmem:[%s936_s5 + $0x38] sm:$0xff] }
   0xa   :  { %606 = vmatprep.subr.bf16.mxu1 %v679_v0  ;;  %626 = vmatpush3.bf16.msra.mxu0 %v625_v33  ;;  %v631_v38 = vpack.c.bf16 %v58_v37, %v57_v36  ;;  %v634_v41 = vpack.c.bf16 %v60_v40, %v59_v39  ;;  %v61_v42 = vld [vmem:[%s936_s5 + $0x40] sm:$0xff]  ;;  %v62_v43 = vld [vmem:[%s936_s5 + $0x48] sm:$0xff]  ;;  %v63_v45 = vld [vmem:[%s936_s5 + $0x50] sm:$0xff] }
   0xb   :  { %627 = vmatprep.subr.bf16.mxu0 %v679_v0  ;;  %v637_v44 = vpack.c.bf16 %v62_v43, %v61_v42  ;;  %v64_v46 = vld [vmem:[%s936_s5 + $0x58] sm:$0xff]  ;;  %v65_v48 = vld [vmem:[%s936_s5 + $0x60] sm:$0xff]  ;;  %v66_v49 = vld [vmem:[%s936_s5 + $0x68] sm:$0xff] }
   0xc   :  { %v640_v47 = vpack.c.bf16 %v64_v46, %v63_v45  ;;  %v643_v50 = vpack.c.bf16 %v66_v49, %v65_v48  ;;  %v426_v51 = vld [vmem:[%s937_s2] ss:$0 sm:$0xff]  ;;  %v67_v56 = vld [vmem:[%s936_s5 + $0x70] sm:$0xff]  ;;  %v68_v57 = vld [vmem:[%s936_s5 + $0x78] sm:$0xff] }
   0xd   :  { %608 = vmatpush3.bf16.msra.mxu1 %v607_v14  ;;  %v646_v58 = vpack.c.bf16 %v68_v57, %v67_v56  ;;  %v70_v59 = vld [vmem:[%s938_s7] sm:$0xff]  ;;  %v71_v60 = vld [vmem:[%s938_s7 + $0x8] sm:$0xff]  ;;  %v72_v61 = vld [vmem:[%s938_s7 + $0x10] sm:$0xff] }
   0xe   :  { %609 = vmatprep.subr.bf16.mxu1 %v679_v0  ;;  %629 = vmatpush3.bf16.msra.mxu0 %v628_v35  ;;  %v649_v62 = vpack.c.bf16 %v71_v60, %v70_v59  ;;  %v73_v63 = vld [vmem:[%s938_s7 + $0x18] sm:$0xff]  ;;  %v74_v2 = vld [vmem:[%s938_s7 + $0x20] sm:$0xff]  ;;  %v76_v5 = vld [vmem:[%s938_s7 + $0x30] sm:$0xff] }
   0xf   :  { %630 = vmatprep.subr.bf16.mxu0 %v679_v0  ;;  %v652_v1 = vpack.c.bf16 %v73_v63, %v72_v61  ;;  %v77_v6 = vld [vmem:[%s938_s7 + $0x38] sm:$0xff]  ;;  %v78_v8 = vld [vmem:[%s938_s7 + $0x40] sm:$0xff]  ;;  %v79_v9 = vld [vmem:[%s938_s7 + $0x48] sm:$0xff] }
  0x10   :  { %v658_v7 = vpack.c.bf16 %v77_v6, %v76_v5  ;;  %v661_v10 = vpack.c.bf16 %v79_v9, %v78_v8  ;;  %v80_v11 = vld [vmem:[%s938_s7 + $0x50] sm:$0xff]  ;;  %v81_v12 = vld [vmem:[%s938_s7 + $0x58] sm:$0xff]  ;;  %v82_v14 = vld [vmem:[%s938_s7 + $0x60] sm:$0xff] }
  0x11   :  { %611 = vmatpush3.bf16.msra.mxu1 %v610_v17  ;;  %v664_v13 = vpack.c.bf16 %v81_v12, %v80_v11  ;;  %v83_v15 = vld [vmem:[%s938_s7 + $0x68] sm:$0xff]  ;;  %v428_v17 = vld [vmem:[%s939_s4] ss:$0 sm:$0xff]  ;;  %v84_v22 = vld [vmem:[%s938_s7 + $0x70] sm:$0xff] }
  0x12   :  { %612 = vmatprep.subr.bf16.mxu1 %v679_v0  ;;  %632 = vmatpush3.bf16.msra.mxu0 %v631_v38  ;;  %v667_v16 = vpack.c.bf16 %v83_v15, %v82_v14 }
  0x13   :  { %633 = vmatprep.subr.bf16.mxu0 %v679_v0 }
  0x15   :  { %614 = vmatpush3.bf16.msra.mxu1 %v613_v20 }
  0x16   :  { %615 = vmatprep.subr.bf16.mxu1 %v679_v0  ;;  %635 = vmatpush3.bf16.msra.mxu0 %v634_v41 }
  0x17   :  { %636 = vmatprep.subr.bf16.mxu0 %v679_v0 }
  0x19   :  { %617 = vmatpush3.bf16.msra.mxu1 %v616_v23  ;;  %v85_v23 = vld [vmem:[%s938_s7 + $0x78] sm:$0xff] }
  0x1a   :  { %618 = vmatprep.subr.bf16.mxu1 %v679_v0  ;;  %638 = vmatpush3.bf16.msra.mxu0 %v637_v44  ;;  %v670_v24 = vpack.c.bf16 %v85_v23, %v84_v22 }
  0x1b   :  { %639 = vmatprep.subr.bf16.mxu0 %v679_v0 }
  0x1d   :  { %620 = vmatpush3.bf16.msra.mxu1 %v619_v26 }
  0x1e   :  { %621 = vmatprep.subr.bf16.mxu1 %v679_v0  ;;  %641 = vmatpush3.bf16.msra.mxu0 %v640_v47 }
  0x1f   :  { %642 = vmatprep.subr.bf16.mxu0 %v679_v0 }
  0x21   :  { %623 = vmatpush3.bf16.msra.mxu1 %v622_v29  ;;  %v430_v29 = vld [vmem:[%s941_s8] ss:$0 sm:$0xff] }
  0x22   :  { %648 = vmatprep.subr.bf16.mxu1 %v679_v0  ;;  %644 = vmatpush3.bf16.msra.mxu0 %v643_v50 }
  0x23   :  { %645 = vmatprep.subr.bf16.mxu0 %v679_v0 }
  0x26   :  { %647 = vmatpush3.bf16.msra.mxu0 %v646_v58 }
  0xda   :  { %v163_v52 = vpop.f32.mrb[0].mxu0 }
  0xdb   :  { %v164_v53 = vadd.f32 %v426_v51, %v163_v52  ;;  %v491_v54 = vpop.f32.mrb[1].mxu0 }
  0xdd   :  { %v167_v55 = vmax.f32 %v164_v53, 0.0 }
  0xdf   :  { %525 = vmatmul.mubr.f32.vlgmr.msra.gmra.mrb[0].mxu1 %v167_v55 }
  0xe0   :  { %594 = vmatprep.mubr.msk.f32.mxu1 %vm680_vm0, %v681_v3  ;;  %650 = vmatpush3.bf16.msra.mxu1 %v649_v62  ;;  %v75_v3 = vld [vmem:[%s938_s7 + $0x28] sm:$0xff] }
  0xe1   :  { %651 = vmatprep.subr.bf16.mxu1 %v679_v0  ;;  %v655_v4 = vpack.c.bf16 %v75_v3, %v74_v2 }
  0xe4   :  { %653 = vmatpush3.bf16.msra.mxu1 %v652_v1 }
  0xe5   :  { %654 = vmatprep.subr.bf16.mxu1 %v679_v0 }
  0xe8   :  { %656 = vmatpush3.bf16.msra.mxu1 %v655_v4 }
  0xe9   :  { %657 = vmatprep.subr.bf16.mxu1 %v679_v0 }
  0xec   :  { %659 = vmatpush3.bf16.msra.mxu1 %v658_v7 }
  0xed   :  { %660 = vmatprep.subr.bf16.mxu1 %v679_v0 }
  0xf0   :  { %662 = vmatpush3.bf16.msra.mxu1 %v661_v10 }
  0xf1   :  { %663 = vmatprep.subr.bf16.mxu1 %v679_v0 }
  0xf4   :  { %665 = vmatpush3.bf16.msra.mxu1 %v664_v13 }
  0xf5   :  { %666 = vmatprep.subr.bf16.mxu1 %v679_v0 }
  0xf8   :  { %668 = vmatpush3.bf16.msra.mxu1 %v667_v16 }
  0xf9   :  { %669 = vmatprep.subr.bf16.mxu1 %v679_v0  ;;  %v429_v0 = vld [vmem:[%s940_s6] ss:$0 sm:$0xff] }
  0xfc   :  { %671 = vmatpush3.bf16.msra.mxu1 %v670_v24 }
 0x1b2   :  { %v240_v18 = vpop.f32.mrb[0].mxu1 }
 0x1b3   :  { %v241_v19 = vadd.f32 %v428_v17, %v240_v18  ;;  %v526_v20 = vpop.f32.mrb[1].mxu1 }
 0x1b5   :  { %v244_v21 = vmax.f32 %v241_v19, 0.0 }
 0x1b7   :  { %560 = vmatmul.mubr.f32.vlgmr.msra.gmra.mrb[2].mxu0 %v244_v21 }
 0x28a   :  { %v317_v25 = vpop.f32.mrb[2].mxu0 }
 0x28b   :  { %v318_v26 = vadd.f32 %v429_v0, %v317_v25  ;;  %v561_v27 = vpop.f32.mrb[3].mxu0 }
 0x28d   :  { %v321_v28 = vmax.f32 %v318_v26, 0.0 }
 0x28f   :  { %595 = vmatmul.mubr.f32.vlgmr.msra.gmra.mrb[2].mxu1 %v321_v28 }
 0x362   :  { %v394_v30 = vpop.f32.mrb[2].mxu1 }
 0x363   :  { %v395_v31 = vadd.f32 %v430_v29, %v394_v30  ;;  %v596_v32 = vpop.f32.mrb[3].mxu1 }
 0x365   :  { %v398_v33 = vmax.f32 %v395_v31, 0.0 }
 0x367   :  { %v403_v34 = vrot.slane %v398_v33, 4 }
 0x369   :  { %v404_v35 = vmax.f32 %v398_v33, %v403_v34 }
 0x36b   :  { %v405_v36 = vrot.slane %v404_v35, 2 }
 0x36d   :  { %v406_v37 = vmax.f32 %v404_v35, %v405_v36 }
 0x36f   :  { %v407_v38 = vrot.slane %v406_v37, 1 }
 0x371   :  { %v408_v39 = vmax.f32 %v406_v37, %v407_v38 }
 0x373   :  { %v409_v40 = vsub.f32 %v398_v33, %v408_v39 }
 0x375   :  { %v410_v41 = vmul.f32 1.442695, %v409_v40 }
 0x377   :  { %675 = vpow2.f32 %v410_v41 }
 0x381   :  { %v676_v42 = vpop.eup %675 }
 0x382   :  { %v413_v43 = vrot.slane %v676_v42, 4 }
 0x384   :  { %v414_v44 = vadd.f32 %v676_v42, %v413_v43 }
 0x386   :  { %v415_v45 = vrot.slane %v414_v44, 2 }
 0x388   :  { %v416_v46 = vadd.f32 %v415_v45, %v414_v44 }
 0x38a   :  { %v417_v47 = vrot.slane %v416_v46, 1 }
 0x38c   :  { %v418_v48 = vadd.f32 %v417_v47, %v416_v46 }
 0x38e   :  { %677 = vrcp.f32 %v418_v48 }
 0x398   :  { %v678_v49 = vpop.eup %677 }
 0x399   :  { %v420_v50 = vmul.f32 %v678_v49, %v676_v42 }
 0x39b   :  { %421 = vst [vmem:[%s942_s9] sm:$0xff] %v420_v50 }

</bundles_post_ra>
